<compile_context>
chip_gen: v7x
topology: tpu7x:2x2x1
jax: 0.10.0
libtpu: 0.0.40
codegen_flags: <defaults>
</compile_context>

<pallas_src>
import functools

import jax
import jax.numpy as jnp
from jax.experimental import pallas as pl
from jax.experimental.pallas import tpu as pltpu


def hga_kernel(x1_ref, x2_ref, wq_ref, bq_ref, wk_ref, bk_ref, wv_ref, bv_ref,
               out_ref, q_sc, m_sc, l_sc, acc_sc, k_sc=None, v_sc=None, *,
               tk, hw_real, mask_keys, matmul_dtype, cache_kv):
    # x1_ref: (C, tq) query-pixel tile, x2_ref: (C, tk) key/value-pixel tile.
    # w*_ref: (Cout, C), b*_ref: (Cout, 1).  out_ref: (Cout, tq) lane-dense.
    # q_sc: (Cout, tq) matmul_dtype, m_sc/l_sc: (1, tq) f32,
    # acc_sc: (Cout, tq) f32, k_sc/v_sc: (Cout, HWp) matmul_dtype (optional).
    qi = pl.program_id(1)
    ki = pl.program_id(2)
    nk = pl.num_programs(2)

    @pl.when(ki == 0)
    def _init():
        # Project Q once per query tile (the x1 block stays resident across
        # the key axis); store it already in the MXU operand dtype so there is
        # no per-key-step cast.  Reset the online-softmax state.
        q = jnp.dot(wq_ref[...], x1_ref[...],
                    preferred_element_type=jnp.float32) + bq_ref[...]
        q_sc[...] = q.astype(q_sc.dtype)
        m_sc[...] = jnp.full_like(m_sc, -jnp.inf)
        l_sc[...] = jnp.zeros_like(l_sc)
        acc_sc[...] = jnp.zeros_like(acc_sc)

    if cache_kv:
        # Project K and V for this key tile only once per batch element (on
        # the qi==0 sweep) and keep them resident in VMEM for all later query
        # tiles.  Note: the x2 block is still streamed by the pipeline for
        # qi>0 (unused); cheap and hidden under compute.
        kv_start = pl.multiple_of(ki * tk, tk)

        @pl.when(qi == 0)
        def _project_kv():
            k = jnp.dot(wk_ref[...], x2_ref[...],
                        preferred_element_type=jnp.float32) + bk_ref[...]
            v = jnp.dot(wv_ref[...], x2_ref[...],
                        preferred_element_type=jnp.float32) + bv_ref[...]
            k_sc[:, pl.ds(kv_start, tk)] = k.astype(k_sc.dtype)
            v_sc[:, pl.ds(kv_start, tk)] = v.astype(v_sc.dtype)

        k_t = k_sc[:, pl.ds(kv_start, tk)]            # (Cout, tk) matmul_dtype
        v_t = v_sc[:, pl.ds(kv_start, tk)]            # (Cout, tk) matmul_dtype
    else:
        # Fallback: recompute the projection every step (original behavior).
        k_t = (jnp.dot(wk_ref[...], x2_ref[...],
                       preferred_element_type=jnp.float32)
               + bk_ref[...]).astype(matmul_dtype)
        v_t = (jnp.dot(wv_ref[...], x2_ref[...],
                       preferred_element_type=jnp.float32)
               + bv_ref[...]).astype(matmul_dtype)

    # Transposed energy tile: s_t[j, i] = <k_j, q_i>  -> (tk, tq).
    # Keys land on sublanes, queries on lanes, so softmax statistics come out
    # lane-oriented (1, tq) and no transposes are needed anywhere.
    s_t = jax.lax.dot_general(k_t, q_sc[...],
                              (((0,), (0,)), ((), ())),
                              preferred_element_type=jnp.float32)

    if mask_keys:
        # Padded key pixels (hw >= hw_real) must not receive attention mass.
        key_idx = ki * tk + jax.lax.broadcasted_iota(jnp.int32,
                                                     (s_t.shape[0], 1), 0)
        s_t = jnp.where(key_idx < hw_real, s_t, jnp.float32(-1e30))

    # Online softmax over keys (axis 0 of s_t); normalization deferred.
    # Elementwise/exp math kept in f32 (v5e-safe, accuracy).
    m_new = jnp.maximum(m_sc[...], jnp.max(s_t, axis=0, keepdims=True))
    alpha = jnp.exp(m_sc[...] - m_new)                # (1, tq)
    p_t = jnp.exp(s_t - m_new)                        # (tk, tq) f32
    l_sc[...] = alpha * l_sc[...] + jnp.sum(p_t, axis=0, keepdims=True)
    acc_sc[...] = alpha * acc_sc[...] + jnp.dot(
        v_t, p_t.astype(matmul_dtype), preferred_element_type=jnp.float32)
    m_sc[...] = m_new

    @pl.when(ki == nk - 1)
    def _finalize():
        inv_l = pl.reciprocal(l_sc[...], approx=True)   # EUP slot, ~free
        out_ref[...] = (acc_sc[...] * inv_l).astype(out_ref.dtype)


def _round_up(x, m):
    return ((x + m - 1) // m) * m


def _pick_tile(hw_padded, cap=1024):
    # hw_padded is always a multiple of 128, so this always returns from loop.
    for t in (1024, 512, 256, 128):
        if t <= cap and t <= hw_padded and hw_padded % t == 0:
            return t
    return 128


def _tpu_defaults():
    """Per-generation defaults: MXU operand dtype and scoped-VMEM limit."""
    kind = ""
    try:
        kind = jax.devices()[0].device_kind.lower()
    except Exception:
        pass
    # bf16 MXU operands on v6e/v7x (bf16-native MXU); f32 elsewhere.
    matmul_dtype = jnp.bfloat16 if ("v6" in kind or "v7" in kind) else jnp.float32

    vmem_cap = None
    try:
        vmem_cap = int(pltpu.get_tpu_info().vmem_capacity_bytes)
    except Exception:
        vmem_cap = None
    if vmem_cap is None:
        vmem_cap = 64 * 1024 * 1024   # conservative fallback (v7x physical)
    # Headroom for Mosaic internal scratch; ~100 MiB on 128 MiB parts
    # (v5e/v6e), ~48 MiB on v7x.
    vmem_limit = max(32 * 1024 * 1024,
                     min(vmem_cap - 16 * 1024 * 1024, 100 * 1024 * 1024))
    return matmul_dtype, vmem_limit


def hga_forward(x1_nchw, x2_nchw, params, *, tq=None, tk=None,
                matmul_dtype=None, cache_kv=None, vmem_limit_bytes=None):
    """HGA forward. x1, x2: (B, C, H, W) float32 -> (B, Cout, H, W).

    matmul_dtype=None auto-selects bf16 MXU operands on v6e/v7x, f32 on v5e.
    cache_kv=None auto-enables the VMEM K/V cache when it fits the budget.
    """
    B, C, H, W = x1_nchw.shape
    assert x2_nchw.shape == x1_nchw.shape
    HW = H * W
    wq, bq, wk, bk, wv, bv = params
    Cout = wq.shape[0]
    assert wq.shape == (Cout, C) and wk.shape == (Cout, C) and wv.shape == (Cout, C)

    auto_dtype, auto_vmem = _tpu_defaults()
    matmul_dtype = auto_dtype if matmul_dtype is None else matmul_dtype
    vmem_limit_bytes = auto_vmem if vmem_limit_bytes is None else vmem_limit_bytes

    # Pad HW to a lane-dense multiple of 128: unmasked vst stores, aligned
    # vreg tiles.  Padded keys are masked in-kernel, padded queries trimmed.
    HWp = max(128, _round_up(HW, 128))
    tq = _pick_tile(HWp) if tq is None else tq
    tk = _pick_tile(HWp) if tk is None else tk
    assert HWp % tq == 0 and HWp % tk == 0 and tq % 128 == 0 and tk % 128 == 0
    mask_keys = HWp != HW

    # Channel-major glue: reshapes only -- no HBM transpose passes.
    x1_f = x1_nchw.reshape(B, C, HW)
    x2_f = x2_nchw.reshape(B, C, HW)
    if mask_keys:
        pad = ((0, 0), (0, 0), (0, HWp - HW))
        x1_f = jnp.pad(x1_f, pad)
        x2_f = jnp.pad(x2_f, pad)
    # TODO(synk): on v7x, optionally cast x1_f/x2_f to bf16 here to halve
    # HBM->VMEM DMA bytes (64 MiB VMEM, 3.2 TB/s HBM); kept f32 for accuracy.

    bq2 = bq.reshape(Cout, 1)
    bk2 = bk.reshape(Cout, 1)
    bv2 = bv.reshape(Cout, 1)

    # K/V VMEM cache decision: cache whenever the two (Cout, HWp) caches fit
    # in about half the scoped-VMEM budget; otherwise per-step recompute.
    # TODO(synk): for huge Cout*HW, hoist the K/V projection into a separate
    # pallas_call and stream (Cout, tk) tiles instead of caching/recomputing.
    cache_bytes = 2 * Cout * HWp * jnp.dtype(matmul_dtype).itemsize
    if cache_kv is None:
        cache_kv = cache_bytes <= vmem_limit_bytes // 2

    grid = (B, HWp // tq, HWp // tk)

    x1_spec = pl.BlockSpec((None, C, tq), lambda b, qi, ki: (b, 0, qi))
    x2_spec = pl.BlockSpec((None, C, tk), lambda b, qi, ki: (b, 0, ki))
    w_spec = pl.BlockSpec((Cout, C), lambda b, qi, ki: (0, 0))
    b_spec = pl.BlockSpec((Cout, 1), lambda b, qi, ki: (0, 0))
    out_spec = pl.BlockSpec((None, Cout, tq), lambda b, qi, ki: (b, 0, qi))

    scratch = [
        pltpu.VMEM((Cout, tq), matmul_dtype),   # cached Q tile (MXU dtype)
        pltpu.VMEM((1, tq), jnp.float32),       # running max
        pltpu.VMEM((1, tq), jnp.float32),       # running sum
        pltpu.VMEM((Cout, tq), jnp.float32),    # running P@V accumulator
    ]
    if cache_kv:
        scratch += [pltpu.VMEM((Cout, HWp), matmul_dtype),   # K cache
                    pltpu.VMEM((Cout, HWp), matmul_dtype)]   # V cache

    # When the K/V cache is active it is filled on the qi==0 sweep and reused
    # for qi>0, so the query-tile axis must stay sequential; batch remains
    # "parallel" (megacore / v7x 2-TC sharding).  Key axis (reduction) last.
    if cache_kv:
        dims = ("parallel", "arbitrary", "arbitrary")
    else:
        dims = ("parallel", "parallel", "arbitrary")

    kernel = functools.partial(
        hga_kernel, tk=tk, hw_real=HW, mask_keys=mask_keys,
        matmul_dtype=matmul_dtype, cache_kv=cache_kv)

    out_f = pl.pallas_call(
        kernel,
        out_shape=jax.ShapeDtypeStruct((B, Cout, HWp), x1_nchw.dtype),
        grid_spec=pltpu.PrefetchScalarGridSpec(
            num_scalar_prefetch=0,
            grid=grid,
            in_specs=[x1_spec, x2_spec, w_spec, b_spec, w_spec, b_spec,
                      w_spec, b_spec],
            out_specs=out_spec,
            scratch_shapes=scratch),
        compiler_params=pltpu.CompilerParams(
            dimension_semantics=dims,
            vmem_limit_bytes=int(vmem_limit_bytes)),
    )(x1_f, x2_f, wq, bq2, wk, bk2, wv, bv2)

    if mask_keys:
        out_f = out_f[:, :, :HW]
    return out_f.reshape(B, Cout, H, W)


def init_params(key, in_channels, out_channels):
    """nn.Conv2d(kernel_size=1)-shaped params: W (Cout, Cin), b (Cout,)."""
    ks = jax.random.split(key, 6)
    bound = 1.0 / jnp.sqrt(in_channels)

    def w(k):
        return jax.random.uniform(k, (out_channels, in_channels),
                                  jnp.float32, -bound, bound)

    def b(k):
        return jax.random.uniform(k, (out_channels,), jnp.float32, -bound, bound)

    return (w(ks[0]), b(ks[1]), w(ks[2]), b(ks[3]), w(ks[4]), b(ks[5]))


def hga_reference(x1, x2, params):
    """Pure-JAX mirror of the PyTorch HGA forward, for correctness check."""
    B, C, H, W = x1.shape
    HW = H * W
    wq, bq, wk, bk, wv, bv = params

    def conv1x1(x, w, b):   # x (B,C,H,W), w (Cout,Cin), b (Cout,)
        return jnp.einsum('oc,bcs->bos', w, x.reshape(B, C, HW)) + b[None, :, None]

    q = conv1x1(x1, wq, bq)                               # (B, Co, HW)
    k = conv1x1(x2, wk, bk)
    v = conv1x1(x2, wv, bv)
    energy = jnp.einsum('bci,bcj->bij', q, k)             # (B, HWq, HWk)
    attn = jax.nn.softmax(energy, axis=-1)
    out = jnp.einsum('bcj,bij->bci', v, attn)             # (B, Co, HW)
    return out.reshape(B, -1, H, W)


if __name__ == "__main__":
    key = jax.random.PRNGKey(0)
    k1, k2, kp, k3, k4, kp2 = jax.random.split(key, 6)

    # --- Test 1: regular shape, explicit f32 MXU path, multi-tile online
    # softmax (HW=256, tq=tk=128 -> 2x2 tiles per batch) with the K/V cache.
    B, C, H, W = 2, 4, 16, 16          # in_channels == out_channels (module's .view)
    x1 = jax.random.normal(k1, (B, C, H, W), jnp.float32)
    x2 = jax.random.normal(k2, (B, C, H, W), jnp.float32)
    params = init_params(kp, C, C)
    ref = hga_reference(x1, x2, params)

    out = jax.block_until_ready(
        hga_forward(x1, x2, params, tq=128, tk=128, matmul_dtype=jnp.float32))
    assert out.shape == (B, C, H, W)
    # Tolerance covers approx reciprocal + online-softmax reassociation.
    assert jnp.allclose(out, ref, atol=1e-2, rtol=1e-2), "f32 path mismatch"

    # --- Test 2: per-generation defaults (bf16 MXU operands on v6e/v7x).
    out_d = jax.block_until_ready(hga_forward(x1, x2, params, tq=128, tk=128))
    assert jnp.allclose(out_d, ref, atol=3e-2, rtol=3e-2), "default path mismatch"

    # --- Test 3: spatial extent not a multiple of 128 -> padded + masked keys;
    # also exercises the no-cache (per-step projection) fallback path.
    B2, C2, H2, W2 = 1, 8, 5, 6
    y1 = jax.random.normal(k3, (B2, C2, H2, W2), jnp.float32)
    y2 = jax.random.normal(k4, (B2, C2, H2, W2), jnp.float32)
    params2 = init_params(kp2, C2, C2)
    ref2 = hga_reference(y1, y2, params2)
    out2 = jax.block_until_ready(
        hga_forward(y1, y2, params2, matmul_dtype=jnp.float32, cache_kv=False))
    assert out2.shape == (B2, C2, H2, W2)
    assert jnp.allclose(out2, ref2, atol=1e-2, rtol=1e-2), "padded path mismatch"

    print("KERNEL_OK")
</pallas_src>

<mosaic_0001>
module attributes {stable_mosaic.version = 11 : i64} {
  func.func @hga_kernel(%arg0: i32, %arg1: i32, %arg2: i32, %arg3: memref<1x4x128xf32, #tpu.memory_space<vmem>>, %arg4: memref<1x4x128xf32, #tpu.memory_space<vmem>>, %arg5: memref<4x4xf32, #tpu.memory_space<vmem>>, %arg6: memref<4x1xf32, #tpu.memory_space<vmem>>, %arg7: memref<4x4xf32, #tpu.memory_space<vmem>>, %arg8: memref<4x1xf32, #tpu.memory_space<vmem>>, %arg9: memref<4x4xf32, #tpu.memory_space<vmem>>, %arg10: memref<4x1xf32, #tpu.memory_space<vmem>>, %arg11: memref<1x4x128xf32, #tpu.memory_space<vmem>>, %arg12: memref<4x128xf32, #tpu.memory_space<vmem>>, %arg13: memref<1x128xf32, #tpu.memory_space<vmem>>, %arg14: memref<1x128xf32, #tpu.memory_space<vmem>>, %arg15: memref<4x128xf32, #tpu.memory_space<vmem>>, %arg16: memref<4x256xf32, #tpu.memory_space<vmem>>, %arg17: memref<4x256xf32, #tpu.memory_space<vmem>>) attributes {dimension_semantics = [#tpu.dimension_semantics<parallel>, #tpu.dimension_semantics<arbitrary>, #tpu.dimension_semantics<arbitrary>], iteration_bounds = array<i64: 2, 2, 2>, scalar_prefetch = 0 : i64, scratch_operands = 6 : i64, tpu.core_type = #tpu.core_type<tc>, window_params = [{transform_indices = @transform_0, window_bounds = array<i64: 1, 4, 128>}, {transform_indices = @transform_1, window_bounds = array<i64: 1, 4, 128>}, {pipeline_mode = #tpu.pipeline_mode<synchronous>, transform_indices = @transform_2, window_bounds = array<i64: 4, 4>}, {pipeline_mode = #tpu.pipeline_mode<synchronous>, transform_indices = @transform_3, window_bounds = array<i64: 4, 1>}, {pipeline_mode = #tpu.pipeline_mode<synchronous>, transform_indices = @transform_4, window_bounds = array<i64: 4, 4>}, {pipeline_mode = #tpu.pipeline_mode<synchronous>, transform_indices = @transform_5, window_bounds = array<i64: 4, 1>}, {pipeline_mode = #tpu.pipeline_mode<synchronous>, transform_indices = @transform_6, window_bounds = array<i64: 4, 4>}, {pipeline_mode = #tpu.pipeline_mode<synchronous>, transform_indices = @transform_7, window_bounds = array<i64: 4, 1>}, {transform_indices = @transform_8, window_bounds = array<i64: 1, 4, 128>}]} {
    %c0_i32 = arith.constant 0 : i32
    %0 = arith.cmpi eq, %arg2, %c0_i32 : i32
    %1 = arith.extui %0 : i1 to i32
    %c0_i32_0 = arith.constant 0 : i32
    %2 = arith.cmpi ne, %1, %c0_i32_0 : i32
    scf.if %2 {
      %c0_24 = arith.constant 0 : index
      %c0_25 = arith.constant 0 : index
      %40 = vector.load %arg5[%c0_24, %c0_25] : memref<4x4xf32, #tpu.memory_space<vmem>>, vector<4x4xf32>
      %c0_26 = arith.constant 0 : index
      %c0_27 = arith.constant 0 : index
      %c0_28 = arith.constant 0 : index
      %41 = vector.load %arg3[%c0_26, %c0_27, %c0_28] : memref<1x4x128xf32, #tpu.memory_space<vmem>>, vector<1x4x128xf32>
      %42 = vector.shape_cast %41 : vector<1x4x128xf32> to vector<4x128xf32>
      %cst_29 = arith.constant dense<0.000000e+00> : vector<4x128xf32>
      %43 = tpu.matmul %40, %42, %cst_29 {dimension_numbers = #tpu.dot_dimension_numbers<[1], [0], [0], [1], [0, 0, 1, 1], [], []>} : vector<4x4xf32>, vector<4x128xf32>, vector<4x128xf32> -> vector<4x128xf32>
      %c0_30 = arith.constant 0 : index
      %c0_31 = arith.constant 0 : index
      %44 = vector.load %arg6[%c0_30, %c0_31] : memref<4x1xf32, #tpu.memory_space<vmem>>, vector<4x1xf32>
      %45 = vector.broadcast %44 : vector<4x1xf32> to vector<4x128xf32>
      %46 = arith.addf %43, %45 : vector<4x128xf32>
      %c0_32 = arith.constant 0 : index
      %c0_33 = arith.constant 0 : index
      %47 = vector.load %arg12[%c0_32, %c0_33] : memref<4x128xf32, #tpu.memory_space<vmem>>, vector<4x128xf32>
      tpu.vector_store %arg12[%c0_32, %c0_33], %46 {strides = array<i32>} : memref<4x128xf32, #tpu.memory_space<vmem>>, vector<4x128xf32>,
      %cst_34 = arith.constant 0xFF800000 : f32
      %48 = vector.broadcast %cst_34 : f32 to vector<1x128xf32>
      %c0_35 = arith.constant 0 : index
      %c0_36 = arith.constant 0 : index
      %49 = vector.load %arg13[%c0_35, %c0_36] : memref<1x128xf32, #tpu.memory_space<vmem>>, vector<1x128xf32>
      tpu.vector_store %arg13[%c0_35, %c0_36], %48 {strides = array<i32>} : memref<1x128xf32, #tpu.memory_space<vmem>>, vector<1x128xf32>,
      %cst_37 = arith.constant 0.000000e+00 : f32
      %50 = vector.broadcast %cst_37 : f32 to vector<1x128xf32>
      %c0_38 = arith.constant 0 : index
      %c0_39 = arith.constant 0 : index
      %51 = vector.load %arg14[%c0_38, %c0_39] : memref<1x128xf32, #tpu.memory_space<vmem>>, vector<1x128xf32>
      tpu.vector_store %arg14[%c0_38, %c0_39], %50 {strides = array<i32>} : memref<1x128xf32, #tpu.memory_space<vmem>>, vector<1x128xf32>,
      %cst_40 = arith.constant 0.000000e+00 : f32
      %52 = vector.broadcast %cst_40 : f32 to vector<4x128xf32>
      %c0_41 = arith.constant 0 : index
      %c0_42 = arith.constant 0 : index
      %53 = vector.load %arg15[%c0_41, %c0_42] : memref<4x128xf32, #tpu.memory_space<vmem>>, vector<4x128xf32>
      tpu.vector_store %arg15[%c0_41, %c0_42], %52 {strides = array<i32>} : memref<4x128xf32, #tpu.memory_space<vmem>>, vector<4x128xf32>,
    } else {
    }
    %c128_i32 = arith.constant 128 : i32
    %3 = arith.muli %arg2, %c128_i32 : i32
    %4 = tpu.assume_multiple %3, 128 : i32
    %c0_i32_1 = arith.constant 0 : i32
    %5 = arith.cmpi eq, %arg1, %c0_i32_1 : i32
    %6 = arith.extui %5 : i1 to i32
    %c0_i32_2 = arith.constant 0 : i32
    %7 = arith.cmpi ne, %6, %c0_i32_2 : i32
    scf.if %7 {
      %c0_24 = arith.constant 0 : index
      %c0_25 = arith.constant 0 : index
      %40 = vector.load %arg7[%c0_24, %c0_25] : memref<4x4xf32, #tpu.memory_space<vmem>>, vector<4x4xf32>
      %c0_26 = arith.constant 0 : index
      %c0_27 = arith.constant 0 : index
      %c0_28 = arith.constant 0 : index
      %41 = vector.load %arg4[%c0_26, %c0_27, %c0_28] : memref<1x4x128xf32, #tpu.memory_space<vmem>>, vector<1x4x128xf32>
      %42 = vector.shape_cast %41 : vector<1x4x128xf32> to vector<4x128xf32>
      %cst_29 = arith.constant dense<0.000000e+00> : vector<4x128xf32>
      %43 = tpu.matmul %40, %42, %cst_29 {dimension_numbers = #tpu.dot_dimension_numbers<[1], [0], [0], [1], [0, 0, 1, 1], [], []>} : vector<4x4xf32>, vector<4x128xf32>, vector<4x128xf32> -> vector<4x128xf32>
      %c0_30 = arith.constant 0 : index
      %c0_31 = arith.constant 0 : index
      %44 = vector.load %arg8[%c0_30, %c0_31] : memref<4x1xf32, #tpu.memory_space<vmem>>, vector<4x1xf32>
      %45 = vector.broadcast %44 : vector<4x1xf32> to vector<4x128xf32>
      %46 = arith.addf %43, %45 : vector<4x128xf32>
      %c0_32 = arith.constant 0 : index
      %c0_33 = arith.constant 0 : index
      %47 = vector.load %arg9[%c0_32, %c0_33] : memref<4x4xf32, #tpu.memory_space<vmem>>, vector<4x4xf32>
      %c0_34 = arith.constant 0 : index
      %c0_35 = arith.constant 0 : index
      %c0_36 = arith.constant 0 : index
      %48 = vector.load %arg4[%c0_34, %c0_35, %c0_36] : memref<1x4x128xf32, #tpu.memory_space<vmem>>, vector<1x4x128xf32>
      %49 = vector.shape_cast %48 : vector<1x4x128xf32> to vector<4x128xf32>
      %cst_37 = arith.constant dense<0.000000e+00> : vector<4x128xf32>
      %50 = tpu.matmul %47, %49, %cst_37 {dimension_numbers = #tpu.dot_dimension_numbers<[1], [0], [0], [1], [0, 0, 1, 1], [], []>} : vector<4x4xf32>, vector<4x128xf32>, vector<4x128xf32> -> vector<4x128xf32>
      %c0_38 = arith.constant 0 : index
      %c0_39 = arith.constant 0 : index
      %51 = vector.load %arg10[%c0_38, %c0_39] : memref<4x1xf32, #tpu.memory_space<vmem>>, vector<4x1xf32>
      %52 = vector.broadcast %51 : vector<4x1xf32> to vector<4x128xf32>
      %53 = arith.addf %50, %52 : vector<4x128xf32>
      %c0_40 = arith.constant 0 : index
      %54 = arith.index_cast %4 : i32 to index
      %55 = vector.load %arg16[%c0_40, %54] : memref<4x256xf32, #tpu.memory_space<vmem>>, vector<4x128xf32>
      tpu.vector_store %arg16[%c0_40, %54], %46 {strides = array<i32>} : memref<4x256xf32, #tpu.memory_space<vmem>>, vector<4x128xf32>,
      %c0_41 = arith.constant 0 : index
      %56 = arith.index_cast %4 : i32 to index
      %57 = vector.load %arg17[%c0_41, %56] : memref<4x256xf32, #tpu.memory_space<vmem>>, vector<4x128xf32>
      tpu.vector_store %arg17[%c0_41, %56], %53 {strides = array<i32>} : memref<4x256xf32, #tpu.memory_space<vmem>>, vector<4x128xf32>,
    } else {
    }
    %c0 = arith.constant 0 : index
    %8 = arith.index_cast %4 : i32 to index
    %9 = vector.load %arg16[%c0, %8] : memref<4x256xf32, #tpu.memory_space<vmem>>, vector<4x128xf32>
    %c0_3 = arith.constant 0 : index
    %10 = arith.index_cast %4 : i32 to index
    %11 = vector.load %arg17[%c0_3, %10] : memref<4x256xf32, #tpu.memory_space<vmem>>, vector<4x128xf32>
    %c0_4 = arith.constant 0 : index
    %c0_5 = arith.constant 0 : index
    %12 = vector.load %arg12[%c0_4, %c0_5] : memref<4x128xf32, #tpu.memory_space<vmem>>, vector<4x128xf32>
    %cst = arith.constant dense<0.000000e+00> : vector<128x128xf32>
    %13 = tpu.matmul %9, %12, %cst {dimension_numbers = #tpu.dot_dimension_numbers<[0], [0], [1], [1], [0, 1, 1, 1], [], []>} : vector<4x128xf32>, vector<4x128xf32>, vector<128x128xf32> -> vector<128x128xf32>
    %c0_6 = arith.constant 0 : index
    %c0_7 = arith.constant 0 : index
    %14 = vector.load %arg13[%c0_6, %c0_7] : memref<1x128xf32, #tpu.memory_space<vmem>>, vector<1x128xf32>
    %cst_8 = arith.constant dense<0xFF800000> : vector<128xf32>
    %15 = vector.multi_reduction <maximumf>, %13, %cst_8 [0] : vector<128x128xf32> to vector<128xf32>
    %16 = vector.shape_cast %15 : vector<128xf32> to vector<1x128xf32>
    %17 = arith.maximumf %14, %16 : vector<1x128xf32>
    %c0_9 = arith.constant 0 : index
    %c0_10 = arith.constant 0 : index
    %18 = vector.load %arg13[%c0_9, %c0_10] : memref<1x128xf32, #tpu.memory_space<vmem>>, vector<1x128xf32>
    %19 = arith.subf %18, %17 : vector<1x128xf32>
    %20 = math.exp %19 : vector<1x128xf32>
    %21 = vector.broadcast %17 : vector<1x128xf32> to vector<128x128xf32>
    %22 = arith.subf %13, %21 : vector<128x128xf32>
    %23 = math.exp %22 : vector<128x128xf32>
    %c0_11 = arith.constant 0 : index
    %c0_12 = arith.constant 0 : index
    %24 = vector.load %arg14[%c0_11, %c0_12] : memref<1x128xf32, #tpu.memory_space<vmem>>, vector<1x128xf32>
    %25 = arith.mulf %20, %24 : vector<1x128xf32>
    %cst_13 = arith.constant dense<0.000000e+00> : vector<128xf32>
    %26 = vector.multi_reduction <add>, %23, %cst_13 [0] : vector<128x128xf32> to vector<128xf32>
    %27 = vector.shape_cast %26 : vector<128xf32> to vector<1x128xf32>
    %28 = arith.addf %25, %27 : vector<1x128xf32>
    %c0_14 = arith.constant 0 : index
    %c0_15 = arith.constant 0 : index
    %29 = vector.load %arg14[%c0_14, %c0_15] : memref<1x128xf32, #tpu.memory_space<vmem>>, vector<1x128xf32>
    tpu.vector_store %arg14[%c0_14, %c0_15], %28 {strides = array<i32>} : memref<1x128xf32, #tpu.memory_space<vmem>>, vector<1x128xf32>,
    %c0_16 = arith.constant 0 : index
    %c0_17 = arith.constant 0 : index
    %30 = vector.load %arg15[%c0_16, %c0_17] : memref<4x128xf32, #tpu.memory_space<vmem>>, vector<4x128xf32>
    %31 = vector.broadcast %20 : vector<1x128xf32> to vector<4x128xf32>
    %32 = arith.mulf %31, %30 : vector<4x128xf32>
    %cst_18 = arith.constant dense<0.000000e+00> : vector<4x128xf32>
    %33 = tpu.matmul %11, %23, %cst_18 {dimension_numbers = #tpu.dot_dimension_numbers<[1], [0], [0], [1], [0, 0, 1, 1], [], []>} : vector<4x128xf32>, vector<128x128xf32>, vector<4x128xf32> -> vector<4x128xf32>
    %34 = arith.addf %32, %33 : vector<4x128xf32>
    %c0_19 = arith.constant 0 : index
    %c0_20 = arith.constant 0 : index
    %35 = vector.load %arg15[%c0_19, %c0_20] : memref<4x128xf32, #tpu.memory_space<vmem>>, vector<4x128xf32>
    tpu.vector_store %arg15[%c0_19, %c0_20], %34 {strides = array<i32>} : memref<4x128xf32, #tpu.memory_space<vmem>>, vector<4x128xf32>,
    %c0_21 = arith.constant 0 : index
    %c0_22 = arith.constant 0 : index
    %36 = vector.load %arg13[%c0_21, %c0_22] : memref<1x128xf32, #tpu.memory_space<vmem>>, vector<1x128xf32>
    tpu.vector_store %arg13[%c0_21, %c0_22], %17 {strides = array<i32>} : memref<1x128xf32, #tpu.memory_space<vmem>>, vector<1x128xf32>,
    %c1_i32 = arith.constant 1 : i32
    %37 = arith.cmpi eq, %arg2, %c1_i32 : i32
    %38 = arith.extui %37 : i1 to i32
    %c0_i32_23 = arith.constant 0 : i32
    %39 = arith.cmpi ne, %38, %c0_i32_23 : i32
    scf.if %39 {
      %c0_24 = arith.constant 0 : index
      %c0_25 = arith.constant 0 : index
      %40 = vector.load %arg14[%c0_24, %c0_25] : memref<1x128xf32, #tpu.memory_space<vmem>>, vector<1x128xf32>
      %41 = tpu.reciprocal %40 {approx = true} : vector<1x128xf32> -> vector<1x128xf32>
      %c0_26 = arith.constant 0 : index
      %c0_27 = arith.constant 0 : index
      %42 = vector.load %arg15[%c0_26, %c0_27] : memref<4x128xf32, #tpu.memory_space<vmem>>, vector<4x128xf32>
      %43 = vector.broadcast %41 : vector<1x128xf32> to vector<4x128xf32>
      %44 = arith.mulf %42, %43 : vector<4x128xf32>
      %c0_28 = arith.constant 0 : index
      %c0_29 = arith.constant 0 : index
      %c0_30 = arith.constant 0 : index
      %45 = vector.load %arg11[%c0_28, %c0_29, %c0_30] : memref<1x4x128xf32, #tpu.memory_space<vmem>>, vector<1x4x128xf32>
      %46 = vector.shape_cast %45 : vector<1x4x128xf32> to vector<4x128xf32>
      %47 = vector.shape_cast %44 : vector<4x128xf32> to vector<1x4x128xf32>
      tpu.vector_store %arg11[%c0_28, %c0_29, %c0_30], %47 {strides = array<i32>} : memref<1x4x128xf32, #tpu.memory_space<vmem>>, vector<1x4x128xf32>,
    } else {
    }
    return
  }
  func.func @transform_0(%arg0: i32, %arg1: i32, %arg2: i32) -> (i32, i32, i32) {
    %c0_i32 = arith.constant 0 : i32
    %c0_i32_0 = arith.constant 0 : i32
    return %arg0, %c0_i32, %arg1 : i32, i32, i32
  }
  func.func @transform_1(%arg0: i32, %arg1: i32, %arg2: i32) -> (i32, i32, i32) {
    %c0_i32 = arith.constant 0 : i32
    %c0_i32_0 = arith.constant 0 : i32
    return %arg0, %c0_i32, %arg2 : i32, i32, i32
  }
  func.func @transform_2(%arg0: i32, %arg1: i32, %arg2: i32) -> (i32, i32) {
    %c0_i32 = arith.constant 0 : i32
    %c0_i32_0 = arith.constant 0 : i32
    %c0_i32_1 = arith.constant 0 : i32
    return %c0_i32, %c0_i32_0 : i32, i32
  }
  func.func @transform_3(%arg0: i32, %arg1: i32, %arg2: i32) -> (i32, i32) {
    %c0_i32 = arith.constant 0 : i32
    %c0_i32_0 = arith.constant 0 : i32
    %c0_i32_1 = arith.constant 0 : i32
    return %c0_i32, %c0_i32_0 : i32, i32
  }
  func.func @transform_4(%arg0: i32, %arg1: i32, %arg2: i32) -> (i32, i32) {
    %c0_i32 = arith.constant 0 : i32
    %c0_i32_0 = arith.constant 0 : i32
    %c0_i32_1 = arith.constant 0 : i32
    return %c0_i32, %c0_i32_0 : i32, i32
  }
  func.func @transform_5(%arg0: i32, %arg1: i32, %arg2: i32) -> (i32, i32) {
    %c0_i32 = arith.constant 0 : i32
    %c0_i32_0 = arith.constant 0 : i32
    %c0_i32_1 = arith.constant 0 : i32
    return %c0_i32, %c0_i32_0 : i32, i32
  }
  func.func @transform_6(%arg0: i32, %arg1: i32, %arg2: i32) -> (i32, i32) {
    %c0_i32 = arith.constant 0 : i32
    %c0_i32_0 = arith.constant 0 : i32
    %c0_i32_1 = arith.constant 0 : i32
    return %c0_i32, %c0_i32_0 : i32, i32
  }
  func.func @transform_7(%arg0: i32, %arg1: i32, %arg2: i32) -> (i32, i32) {
    %c0_i32 = arith.constant 0 : i32
    %c0_i32_0 = arith.constant 0 : i32
    %c0_i32_1 = arith.constant 0 : i32
    return %c0_i32, %c0_i32_0 : i32, i32
  }
  func.func @transform_8(%arg0: i32, %arg1: i32, %arg2: i32) -> (i32, i32, i32) {
    %c0_i32 = arith.constant 0 : i32
    %c0_i32_0 = arith.constant 0 : i32
    return %arg0, %c0_i32, %arg1 : i32, i32, i32
  }
}

</mosaic_0001>

<bundles_post_ra>
// kernel: tpu_custom_call.1
= control target key start
LH: loop header
LB: loop body
LE: loop exit
PB: predicated region body
PF: predicated region fallthrough
CT: control target
= control target key end

     0   :  { %s2085_s0 = inlined_call_operand.hbm [shape: f32[2,4,256], index: 0, kind: input, shape index: {}]   ;;  %s2086_s1 = inlined_call_operand.vmem [shape: f32[2,4,256], index: 1, kind: input, shape index: {}]   ;;  %s2087_s2 = inlined_call_operand.vmem [shape: f32[4,4], index: 2, kind: input, shape index: {}]   ;;  %s2088_s3 = inlined_call_operand.vmem [shape: f32[4,1], index: 3, kind: input, shape index: {}]   ;;  %s2089_s4 = inlined_call_operand.vmem [shape: f32[4,4], index: 4, kind: input, shape index: {}]   ;;  %s2090_s5 = inlined_call_operand.vmem [shape: f32[4,1], index: 5, kind: input, shape index: {}]   ;;  %s2091_s6 = inlined_call_operand.vmem [shape: f32[4,4], index: 6, kind: input, shape index: {}]   ;;  %s2092_s7 = inlined_call_operand.vmem [shape: f32[4,1], index: 7, kind: input, shape index: {}]   ;;  %s2093_s8 = inlined_call_operand.hbm [shape: f32[2,4,256], index: 8, kind: output, shape index: {}]  }
   0x1   :  { %2102 = sst [smem:[#allocation20_spill]] %s2090_s5 }
   0x2   :  { %2103 = sst [smem:[#allocation21_spill]] %s2091_s6 }
   0x3   :  { %2104 = sst [smem:[#allocation22_spill]] %s2092_s7 }
   0x4   :  { %2105 = sst [smem:[#allocation23_spill]] %s2093_s8 }
   0x5   :  { %13 = vsyncpa [#allocation9], 0 }
   0x6   :  { %15 = vsyncpa [#allocation9 + $0x1], 0 }
   0x7   :  { %16 = vsyncpa [#allocation10], 0 }
   0x8   :  { %18 = vsyncpa [#allocation10 + $0x1], 0  ;;  %s1756_s27 = smov 0   ;;  %s1758_s28 = smov 0  }
   0x9   :  { %s1760_s29 = smov 0   ;;  %s1762_s30 = smov 0  }
   0xa   :  { %s1764_s9 = smov 0   ;;  %s1766_s10 = smov 0  }
   0xb   :  { %s1768_s11 = smov 0   ;;  %s1770_s12 = smov 0  }
   0xc   :  { %s1772_s13 = smov 0   ;;  %s1774_s14 = smov 0  }
   0xd LB: > { %2106 = sst [smem:[#allocation14_spill]] %s1661_s27  ;;  %s1223_s15 = sadd.s32 4294967295, %s1697_s14   ;;  %s1697_s14 = sphi %s1774_s14, %s24_s14   ;;  %s1693_s13 = sphi %s1772_s13, %s2137_s13   ;;  %s1689_s12 = sphi %s1770_s12, %s2136_s12   ;;  %s1685_s11 = sphi %s1768_s11, %s2129_s11   ;;  %s1681_s10 = sphi %s1766_s10, %s2135_s10   ;;  %s1677_s9 = sphi %s1764_s9, %s2134_s9   ;;  %s1673_s30 = sphi %s1762_s30, %s2128_s30   ;;  %s1669_s29 = sphi %s1760_s29, %s2133_s29   ;;  %s1665_s28 = sphi %s1758_s28, %s2132_s28   ;;  %s1661_s27 = sphi %s1756_s27, %s2131_s27  }
   0xe   : > { %2107 = sst [smem:[#allocation15_spill]] %s1685_s11  ;;  %s1224_s16 = sadd.s32 4294967294, %s1697_s14  }
   0xf   : > { %s36_s17 = sadd.s32 1, %s1685_s11  ;;  %s39_s18 = sadd.s32 1, %s1689_s12 }
  0x10   : > { %p37_p0 = scmp.ge.s32.totalorder %s36_s17, 2  ;;  %s43_s19 = sadd.s32 1, %s1693_s13 }
  0x11   : > { %s52_s20 = sadd.s32 1, %s1669_s29  ;;  %p59_p1 = scmp.ne.s32.totalorder %s1669_s29, %s1665_s28 }
  0x12   : > { %s2139_s17 = smov (%p37_p0, %s36_s17), 0  ;;  %s2141_s18 = smov (!%p37_p0, %s39_s18), %s1689_s12 }
  0x13   : > { %2108 = sst [smem:[#allocation16_spill]] %s2139_s17  ;;  %p60_p2 = scmp.eq.s32.totalorder %s1697_s14, 0 }
  0x14   : > { %p65_p3 = scmp.ne.s32.totalorder %s1665_s28, %s1661_s27  ;;  %p41_p4 = scmp.ge.s32.totalorder %s2141_s18, 2 }
  0x15   : > { %p66_p5 = scmp.eq.s32.totalorder %s1223_s15, 0  ;;  %p1823_p6 = por %p60_p2, %p59_p1 }
  0x16   : > { %p245_p7 = scmp.eq.s32.totalorder %s1223_s15, 7  ;;  %s2143_s18 = smov (%p41_p4, %s2141_s18), 0 }
  0x17   : > { %2110 = sst [smem:[#allocation17_spill]] %s2143_s18  ;;  %s2145_s19 = smov (!%p41_p4, %s43_s19), %s1693_s13 }
  0x18   : > { %s48_s22 = ssub.s32 %s1689_s12, %s2143_s18  ;;  %p1835_p8 = por %p66_p5, %p65_p3 }
  0x19   : > { %p45_p9 = scmp.ge.s32.totalorder %s2145_s19, 2  ;;  %p1842_p10 = por %p245_p7, %p59_p1 }
  0x1a   : > { %p251_p11 = scmp.eq.s32.totalorder %s1224_s16, 7  ;;  %p1423_p13 = scmp.lt.s32.totalorder %s1697_s14, 8 }
  0x1b   : > { %s2112_s24 = scalar_select %p1842_p10, 1, 0 }
  0x1c   : > { %s2147_s19 = smov (%p45_p9, %s2145_s19), 0  ;;  %p1851_p12 = por %p251_p11, %p65_p3 }
  0x1d   : > { %2113 = sst [smem:[#allocation18_spill]] %s2112_s24  ;;  %s47_s26 = ssub.s32 %s1693_s13, %s2147_s19 }
  0x1e   : > { %s2114_s25 = scalar_select %p1851_p12, 1, 0 }
  0x1f   : > { %s289_s15 = sand.u32 1, %s1669_s29   ;;  %s49_s18 = sor.u32 %s48_s22, %s47_s26 }
  0x20   : > { %2115 = sst [smem:[#allocation19_spill]] %s2114_s25  ;;  %p50_p0 = scmp.eq.s32.totalorder %s49_s18, 0 }
  0x21   : > { %s1227_s17 = sshll.u32 %s289_s15, 2  ;;  %s1228_s11 = sshll.u32 %s1693_s13, 1 }
  0x22   : > { %s1861_s16 = scalar_select %p50_p0, %s1669_s29, %s52_s20  }
  0x23   : > { %s298_s8 = sadd.s32 %s1689_s12, %s1228_s11  ;;  %s293_s27 = scalar_lea.vmem [#allocation8], %s1227_s17 }
  0x24   : > { %s302_s24 = sshll.u32 %s293_s27, 4  ;;  %s1229_s7 = sshll.u32 %s298_s8, 6  ;;  %s1864_s24 = int_to_ptr.vmem [resolvable:$true] %s302_s24 }
  0x25   : > { %s1869_s25 = scalar_lea.hbm %s2085_s0, %s1229_s7  ;;  %p1875_p1 = pnand %p1423_p13, %p1823_p6 }
  0x26   : > { %s290_s8 = scalar_lea.sflag [#allocation9], %s289_s15  ;;  %s1553_s27 = scalar_lea.hbm %s1869_s25, 64 }
  0x27   : > { %p1554_p4 = scmp.ne.s32.totalorder %s1869_s25, %s1553_s27  ;;  %p1555_p5 = pneg %p1875_p1 }
  0x28   : > { %s1558_s7 = scalar_lea.hbm %s2085_s0, 256  ;;  %p1559_p6 = scmp.lt.u32.totalorder %s1869_s25, %s2085_s0 }
  0x29   : > { %p1556_p7 = pnand %p1555_p5, %p1554_p4  ;;  %p1560_p11 = scmp.lt.u32.totalorder %s1558_s7, %s1553_s27 }
  0x2a   : > { %p1562_p0 = scmp.lt.u32.totalorder %s1553_s27, %s1869_s25 }
  0x2b   : > { %p1557_p9 = pneg %p1556_p7  ;;  %p1561_p13 = por %p1560_p11, %p1559_p6 }
  0x2d   : > { %p1563_p2 = por %p1562_p0, %p1561_p13 }
  0x2f   : > { %p1564_p3 = pnand %p1563_p2, %p1557_p9 }
  0x31   : > { %1567 = shalt.err (!%p1564_p3)
}
  0x32   : > { %s1568_s20 = scalar_lea.vmem %s1864_s24, 64  ;;  %s1699_s21 = smov [#allocation8]  }
  0x33   : > { %p1569_p4 = scmp.ne.s32.totalorder %s1864_s24, %s1568_s20  ;;  %s1573_s22 = sshll.u32 %s1699_s21, 4  ;;  %s1574_s22 = int_to_ptr.vmem [resolvable:$false] %s1573_s22 }
  0x34   : > { %s1575_s26 = scalar_lea.vmem %s1574_s22, 128  ;;  %p1576_p10 = scmp.lt.s32.totalorder %s1864_s24, %s1574_s22 }
  0x35   : > { %p1571_p7 = pnand %p1569_p4, %p1555_p5  ;;  %p1577_p6 = scmp.lt.s32.totalorder %s1575_s26, %s1568_s20 }
  0x37   : > { %p1572_p12 = pneg %p1571_p7  ;;  %p1578_p11 = por %p1577_p6, %p1576_p10 }
  0x39   : > { %p1579_p13 = pnand %p1578_p11, %p1572_p12 }
  0x3b   : > { %1582 = shalt.err (!%p1579_p13)
}
  0x3c   : > { %1418 = dma.hbm_to_vmem [thread:$0]  (!%p1875_p1), %s1869_s25, 64, %s1864_s24, %s290_s8  }
  0x3d   : > { %p2117_p2 = scmp.lt.s32.totalorder %s1697_s14, 9  ;;  %p2118_p3 = scmp.ge.s32.totalorder %s1697_s14, 1 }
  0x3f   : > { %p319_p5 = pnand %p2118_p3, %p2117_p2 }
  0x40   : > { %s1911_s15 = sand.u32 (!%p319_p5), 1, %s1665_s28  }
  0x41   : > { %322 = sbr.rel (%p319_p5) target bundleno = 1250 (0x4e2), region = 52  ;;  %s1231_s27 = sshll.u32 (!%p319_p5), %s1911_s15, 2 }
  0x42   : > { %s325_s5 = scalar_lea.sflag (!%p319_p5), [#allocation9], %s1911_s15  ;;  %s328_s6 = scalar_lea.vmem (!%p319_p5), [#allocation8], %s1231_s27 }
  0x48   : > { %1652 = dma.done.wait (%p1835_p8), %s325_s5, 64  }
  0x49   : > { %1654 = vsyncadd (%p1835_p8), %s325_s5, 4294967232  ;;  %p369_p10 = scmp.lt.s32.totalorder %s1681_s10, 1  ;;  %p371_p12 = scmp.lt.s32.totalorder %s1673_s30, 1 }
  0x4a   : > { %s1928_s21 = scalar_lea.vmem [#allocation11], %s1231_s27  ;;  %p1235_p8 = scmp.ne.s32.totalorder %s1673_s30, 0 }
  0x4b   : > { %s370_s24 = scalar_select %p369_p10, %s1681_s10, 1 }
  0x4c   : > { %s372_s25 = scalar_select %p371_p12, %s1673_s30, 1 }
  0x4d   : > { %s1233_s18 = sshll.u32 %s370_s24, 1  ;;  %380 = sbr.rel (%p1235_p8) target bundleno = 296 (0x128), region = 60  ;;  %v382_v0 = vld [vmem:[%s328_s6] sm:$0xf] (!%p1235_p8)  ;;  %vm393_vm0 = vcmask (!%p1235_p8), 1043456   ;;  %vm389_vm1 = vcmask (!%p1235_p8), 31744  }
  0x4e   : > { %s374_s8 = sadd.s32 %s1233_s18, %s372_s25  ;;  %v1700_v1 = vmov (!%p1235_p8), 0.0   ;;  %vm1701_vm2 = vmmov (!%p1235_p8), 0   ;;  %v381_v2 = vld [vmem:[%s2087_s2] sm:$0xf] (!%p1235_p8)  ;;  %v1702_v4 = vmov (!%p1235_p8), 0   ;;  %v1703_v5 = vmov (!%p1235_p8), -inf  }
  0x4f   : > { %s1234_s7 = sshll.u32 %s374_s8, 2  ;;  %1311 = vmatprep.subr.mxu0 (!%p1235_p8), %v1700_v1  ;;  %469 = vst [vmem:[#allocation4] sm:$0x1] (!%p1235_p8), %v1700_v1  ;;  %470 = vst [vmem:[#allocation5] sm:$0xf] (!%p1235_p8), %v1700_v1  ;;  %1313 = vmatprep.mubr.msk.f32.mxu0 (!%p1235_p8), %vm1701_vm2, %v1700_v1 }
  0x50   : > { %s1926_s20 = scalar_lea.vmem %s2086_s1, %s1234_s7  ;;  %v383_v3 = vld [vmem:[%s2088_s3] sm:$0xf] (!%p1235_p8)  ;;  %1312 = vmatpush3.msk.msra.mxu0 (!%p1235_p8), %vm393_vm0, %v382_v0  ;;  %1515 = vset.pattern.permute.xlu0 (!%p1235_p8), %v1702_v4  ;;  %468 = vst [vmem:[#allocation3] sm:$0x1] (!%p1235_p8), %v1703_v5 }
  0x51   : > { %1314 = vmatmul.mubr.msk.f32.vlgmr.msra.gmra.mrb[0].mxu0 (!%p1235_p8), %vm389_vm1, %v381_v2  ;;  %386 = vperm.xlu0 (!%p1235_p8), %1515, %v383_v3  }
  0xd0   : > { %v387_v6 = vpop.permute.xlu0 %386 }
 0x124   : > { %v463_v7 = vpop.f32.mrb[0].mxu0 }
 0x125   : > { %v464_v8 = vadd.f32 %v463_v7, %v387_v6  ;;  %v1315_v9 = vpop.f32.mrb[1].mxu0 }
 0x127   : > { %467 = vst [vmem:[#allocation2] sm:$0xf] %v464_v8 }
 0x128 PF: > { %s1238_s27 = sshll.u32 %s1673_s30, 7  ;;  %p1239_p1 = scmp.ne.s32.totalorder %s1677_s9, 0 }
 0x129   : > { %v477_v10 = vld [vmem:[%s1926_s20] sm:$0xf] (!%p1239_p1)  ;;  %vm488_vm3 = vcmask (!%p1239_p1), 1043456   ;;  %v1704_v11 = vmov (!%p1239_p1), 0.0   ;;  %vm484_vm4 = vcmask (!%p1239_p1), 31744   ;;  %s2119_s8 = sld [smem:[#allocation21_spill]] (!%p1239_p1) }
 0x12a   : > { %475 = sbr.rel (%p1239_p1) target bundleno = 519 (0x207), region = 64  ;;  %1316 = vmatprep.subr.mxu0 (!%p1239_p1), %v1704_v11  ;;  %1321 = vmatprep.subr.mxu1 (!%p1239_p1), %v1704_v11  ;;  %v476_v12 = vld [vmem:[%s2089_s4] sm:$0xf] (!%p1239_p1)  ;;  %vm1705_vm5 = vmmov (!%p1239_p1), 0   ;;  %s2120_s17 = sld [smem:[#allocation20_spill]] (!%p1239_p1)  ;;  %v1706_v15 = vmov (!%p1239_p1), 0  }
 0x12b   : > { %1317 = vmatpush3.msk.msra.mxu0 (!%p1239_p1), %vm488_vm3, %v477_v10  ;;  %1318 = vmatprep.mubr.msk.f32.mxu0 (!%p1239_p1), %vm1705_vm5, %v1704_v11  ;;  %s2121_s22 = sld [smem:[#allocation22_spill]] (!%p1239_p1)  ;;  %s642_s26 = sshra.s32 (!%p1239_p1), %s1238_s27, 7 }
 0x12c   : > { %1322 = vmatpush3.msk.msra.mxu1 (!%p1239_p1), %vm488_vm3, %v477_v10  ;;  %1323 = vmatprep.mubr.msk.f32.mxu1 (!%p1239_p1), %vm1705_vm5, %v1704_v11  ;;  %s1244_s5 = sshll.u32 (!%p1239_p1), %s642_s26, 2 }
 0x12d   : > { %1319 = vmatmul.mubr.msk.f32.vlgmr.msra.gmra.mrb[0].mxu0 (!%p1239_p1), %vm484_vm4, %v476_v12  ;;  %1516 = vset.pattern.permute.xlu0 (!%p1239_p1), %v1706_v15  ;;  %s645_s6 = scalar_lea.vmem (!%p1239_p1), [#allocation6], %s1244_s5  ;;  %s648_s24 = scalar_lea.vmem (!%p1239_p1), [#allocation7], %s1244_s5 }
 0x12f   : > { %v562_v13 = vld [vmem:[%s2119_s8] sm:$0xf] (!%p1239_p1) }
 0x130   : > { %v478_v14 = vld [vmem:[%s2120_s17] sm:$0xf] (!%p1239_p1)  ;;  %1324 = vmatmul.mubr.msk.f32.vlgmr.msra.gmra.mrb[0].mxu1 (!%p1239_p1), %vm484_vm4, %v562_v13 }
 0x131   : > { %481 = vperm.xlu0 %1516, %v478_v14   ;;  %v563_v16 = vld [vmem:[%s2121_s22] sm:$0xf] }
 0x135   : > { %566 = vperm.xlu0 %1516, %v563_v16  }
 0x1b0   : > { %v482_v17 = vpop.permute.xlu0 %481 }
 0x1b4   : > { %v567_v18 = vpop.permute.xlu0 %566 }
 0x200   : > { %v558_v19 = vpop.f32.mrb[0].mxu0 }
 0x201   : > { %v559_v21 = vadd.f32 %v558_v19, %v482_v17  ;;  %v1320_v23 = vpop.f32.mrb[1].mxu0 }
 0x203   : > { %v638_v20 = vpop.f32.mrb[0].mxu1  ;;  %646 = vst [vmem:[%s645_s6] sm:$0xf] %v559_v21 }
 0x204   : > { %v639_v22 = vadd.f32 %v638_v20, %v567_v18  ;;  %v1325_v24 = vpop.f32.mrb[1].mxu1 }
 0x206   : > { %649 = vst [vmem:[%s648_s24] sm:$0xf] %v639_v22 }
 0x207 PF: > { %s1956_s25 = sshra.s32 %s1238_s27, 7  ;;  %v658_v26 = vld [vmem:[#allocation2] sm:$0xf]  ;;  %vm740_vm6 = vcmask 1043456   ;;  %vm691_vm7 = vcmask 31744   ;;  %v1707_v43 = vmov 0.0|0.0   ;;  %v916_v14 = vlaneseq }
 0x208   : > { %s1246_s18 = sshll.u32 %s1956_s25, 2  ;;  %1326 = vmatprep.subr.msk.mxu0 %vm740_vm6, %v658_v26  ;;  %1387 = vmatprep.subr.bf16.mxu1 %v1707_v43  ;;  %vm1708_vm8 = vmmov 0   ;;  %v1709_v48 = vmov 0.0   ;;  %v889_v19 = vld [vmem:[#allocation3] sm:$0x1]  ;;  %p1265_p9 = scmp.ne.s32.totalorder %s1673_s30, 1 }
 0x209   : > { %s653_s8 = scalar_lea.vmem [#allocation6], %s1246_s18  ;;  %1327 = vmatpush3.msk.msra.mxu0 %vm740_vm6, %v658_v26  ;;  %1384 = vmatprep.mubr.msk.f32.mxu1 %vm1708_vm8, %v1709_v48  ;;  %v917_v17 = vshrl.u32 %v916_v14, 7  ;;  %s656_s27 = scalar_lea.vmem [#allocation7], %s1246_s18 }
 0x20a   : > { %v654_v25 = vld [vmem:[%s653_s8] sm:$0xf] }
 0x20b   : > { %659 = vxpose.xlu0.b32.start.end [1/1] (short) %v654_v25, 128  ;;  %v2002_v21 = vsub.s32 0, %v917_v17 }
 0x28b   : > { %v675_v27 = vpop.trf.xlu0 }
 0x28c   : > { %1328 = vmatprep.mubr.msk.f32.mxu0 %vm691_vm7, %v675_v27 }
 0x28f   : > { %v676_v28 = vpop.trf.xlu0 }
 0x290   : > { %1329 = vmatmul.mubr.msk.f32.vlgmr.msra.gmra.mrb[0].mxu0 %vm691_vm7, %v676_v28 }
 0x293   : > { %v677_v29 = vpop.trf.xlu0 }
 0x294   : > { %1331 = vmatprep.mubr.msk.f32.mxu0 %vm691_vm7, %v677_v29 }
 0x297   : > { %v678_v30 = vpop.trf.xlu0 }
 0x298   : > { %1332 = vmatmul.mubr.msk.f32.gmra.mrb[2].mxu0 %vm691_vm7, %v678_v30 }
 0x29b   : > { %v679_v31 = vpop.trf.xlu0 }
 0x29c   : > { %1334 = vmatprep.mubr.msk.f32.mxu0 %vm691_vm7, %v679_v31 }
 0x29f   : > { %v680_v32 = vpop.trf.xlu0 }
 0x2a0   : > { %1335 = vmatmul.mubr.msk.f32.gmra.mrb[4].mxu0 %vm691_vm7, %v680_v32 }
 0x2a3   : > { %v681_v33 = vpop.trf.xlu0 }
 0x2a4   : > { %1337 = vmatprep.mubr.msk.f32.mxu0 %vm691_vm7, %v681_v33 }
 0x2a7   : > { %v682_v34 = vpop.trf.xlu0 }
 0x2a8   : > { %1338 = vmatmul.mubr.msk.f32.gmra.mrb[6].mxu0 %vm691_vm7, %v682_v34 }
 0x2ab   : > { %v683_v35 = vpop.trf.xlu0 }
 0x2ac   : > { %1340 = vmatprep.mubr.msk.f32.mxu0 %vm691_vm7, %v683_v35 }
 0x2af   : > { %v684_v36 = vpop.trf.xlu0 }
 0x2b0   : > { %1341 = vmatmul.mubr.msk.f32.gmra.mrb[8].mxu0 %vm691_vm7, %v684_v36 }
 0x2b3   : > { %v685_v37 = vpop.trf.xlu0 }
 0x2b4   : > { %1343 = vmatprep.mubr.msk.f32.mxu0 %vm691_vm7, %v685_v37 }
 0x2b7   : > { %v686_v38 = vpop.trf.xlu0 }
 0x2b8   : > { %1344 = vmatmul.mubr.msk.f32.gmra.mrb[10].mxu0 %vm691_vm7, %v686_v38 }
 0x2bb   : > { %v687_v39 = vpop.trf.xlu0 }
 0x2bc   : > { %1346 = vmatprep.mubr.msk.f32.mxu0 %vm691_vm7, %v687_v39 }
 0x2bf   : > { %v688_v40 = vpop.trf.xlu0 }
 0x2c0   : > { %1347 = vmatmul.mubr.msk.f32.gmra.mrb[12].mxu0 %vm691_vm7, %v688_v40 }
 0x2c3   : > { %v689_v41 = vpop.trf.xlu0 }
 0x2c4   : > { %1349 = vmatprep.mubr.msk.f32.mxu0 %vm691_vm7, %v689_v41 }
 0x2c7   : > { %v690_v42 = vpop.trf.xlu0 }
 0x2c8   : > { %1350 = vmatmul.mubr.msk.f32.gmra.mrb[14].mxu0 %vm691_vm7, %v690_v42 }
 0x363   : > { %v1978_v44 = vpop.f32.mrb[0].mxu0 }
 0x364   : > { %v810_v45 = vpop.f32.mrb[1].mxu0 }
 0x36b   : > { %v1980_v46 = vpop.f32.mrb[2].mxu0 }
 0x36c   : > { %v820_v47 = vpop.f32.mrb[3].mxu0 }
 0x373   : > { %v1982_v49 = vpop.f32.mrb[4].mxu0 }
 0x374   : > { %v891_v50 = vmax.f32 %v1978_v44, %v1982_v49  ;;  %v830_v51 = vpop.f32.mrb[5].mxu0 }
 0x375   : > { %v890_v52 = vmax.f32 %v810_v45, %v830_v51 }
 0x37b   : > { %v1986_v53 = vpop.f32.mrb[6].mxu0 }
 0x37c   : > { %v893_v54 = vmax.f32 %v1980_v46, %v1986_v53  ;;  %v840_v55 = vpop.f32.mrb[7].mxu0 }
 0x37d   : > { %v892_v56 = vmax.f32 %v820_v47, %v840_v55 }
 0x383   : > { %v1990_v57 = vpop.f32.mrb[8].mxu0 }
 0x384   : > { %v895_v58 = vmax.f32 %v891_v50, %v1990_v57  ;;  %v850_v59 = vpop.f32.mrb[9].mxu0 }
 0x385   : > { %v894_v60 = vmax.f32 %v890_v52, %v850_v59 }
 0x38b   : > { %v1993_v61 = vpop.f32.mrb[10].mxu0 }
 0x38c   : > { %v897_v62 = vmax.f32 %v893_v54, %v1993_v61  ;;  %v860_v63 = vpop.f32.mrb[11].mxu0 }
 0x38d   : > { %v896_v0 = vmax.f32 %v892_v56, %v860_v63 }
 0x393   : > { %v1996_v1 = vpop.f32.mrb[12].mxu0 }
 0x394   : > { %v899_v2 = vmax.f32 %v895_v58, %v1996_v1  ;;  %v870_v3 = vpop.f32.mrb[13].mxu0 }
 0x395   : > { %v898_v4 = vmax.f32 %v894_v60, %v870_v3 }
 0x397   : > { %v902_v5 = vmax.f32 %v898_v4, %v899_v2 }
 0x39b   : > { %v1999_v6 = vpop.f32.mrb[14].mxu0 }
 0x39c   : > { %v901_v7 = vmax.f32 %v897_v62, %v1999_v6  ;;  %v880_v8 = vpop.f32.mrb[15].mxu0 }
 0x39d   : > { %v900_v9 = vmax.f32 %v896_v0, %v880_v8 }
 0x39f   : > { %v903_v10 = vmax.f32 %v900_v9, %v901_v7 }
 0x3a1   : > { %v904_v11 = vmax.f32 %v902_v5, %v903_v10 }
 0x3a3   : > { %v905_v12 = vrot.slane %v904_v11, 4 }
 0x3a5   : > { %v906_v13 = vmax.f32 %v904_v11, %v905_v12 }
 0x3a7   : > { %v907_v15 = vrot.slane %v906_v13, 2 }
 0x3a9   : > { %v908_v16 = vmax.f32 %v906_v13, %v907_v15 }
 0x3ab   : > { %v909_v18 = vrot.slane %v908_v16, 1 }
 0x3ad   : > { %v910_v20 = vmax.f32 %v908_v16, %v909_v18 }
 0x3af   : > { %v911_v22 = vmax.f32 %v889_v19, %v910_v20 }
 0x3b1   : > { %v919_v23 = vrot.slane %v911_v22, %v2002_v21  ;;  %1074 = vst [vmem:[#allocation3] sm:$0x1] %v911_v22  ;;  %v912_v54 = vsub.f32 %v889_v19, %v911_v22 }
 0x3b3   : > { %v921_v24 = vsub.f32 %v810_v45, %v919_v23  ;;  %v922_v25 = vsub.f32 %v1978_v44, %v919_v23  ;;  %v923_v26 = vsub.f32 %v820_v47, %v919_v23  ;;  %v924_v27 = vsub.f32 %v1980_v46, %v919_v23 }
 0x3b4   : > { %v925_v28 = vsub.f32 %v830_v51, %v919_v23  ;;  %v926_v29 = vsub.f32 %v1982_v49, %v919_v23  ;;  %v927_v30 = vsub.f32 %v840_v55, %v919_v23  ;;  %v928_v31 = vsub.f32 %v1986_v53, %v919_v23 }
 0x3b5   : > { %v929_v32 = vsub.f32 %v850_v59, %v919_v23  ;;  %v930_v33 = vsub.f32 %v1990_v57, %v919_v23  ;;  %v931_v34 = vsub.f32 %v860_v63, %v919_v23  ;;  %v932_v35 = vsub.f32 %v1993_v61, %v919_v23 }
 0x3b6   : > { %v933_v36 = vsub.f32 %v870_v3, %v919_v23  ;;  %v934_v37 = vsub.f32 %v1996_v1, %v919_v23  ;;  %v935_v38 = vsub.f32 %v880_v8, %v919_v23  ;;  %v936_v39 = vsub.f32 %v1999_v6, %v919_v23 }
 0x3b7   : > { %v937_v40 = vmul.f32 1.442695, %v921_v24  ;;  %v939_v41 = vmul.f32 1.442695, %v922_v25  ;;  %v941_v42 = vmul.f32 1.442695, %v923_v26 }
 0x3b8   : > { %v943_v44 = vmul.f32 1.442695, %v924_v27  ;;  %v945_v45 = vmul.f32 1.442695, %v925_v28  ;;  %v947_v46 = vmul.f32 1.442695, %v926_v29 }
 0x3b9   : > { %1517 = vpow2.f32 %v937_v40  ;;  %v949_v47 = vmul.f32 1.442695, %v927_v30  ;;  %v951_v48 = vmul.f32 1.442695, %v928_v31  ;;  %v953_v49 = vmul.f32 1.442695, %v929_v32 }
 0x3ba   : > { %1519 = vpow2.f32 %v939_v41  ;;  %v955_v50 = vmul.f32 1.442695, %v930_v33  ;;  %v957_v51 = vmul.f32 1.442695, %v931_v34  ;;  %v959_v52 = vmul.f32 1.442695, %v932_v35 }
 0x3bb   : > { %1521 = vpow2.f32 %v941_v42  ;;  %v961_v53 = vmul.f32 1.442695, %v933_v36  ;;  %v963_v55 = vmul.f32 1.442695, %v934_v37  ;;  %v965_v57 = vmul.f32 1.442695, %v935_v38 }
 0x3bc   : > { %1523 = vpow2.f32 %v943_v44  ;;  %v967_v59 = vmul.f32 1.442695, %v936_v39  ;;  %v913_v63 = vmul.f32 1.442695, %v912_v54  ;;  %v657_v38 = vld [vmem:[%s656_s27] sm:$0xf] }
 0x3bd   : > { %1525 = vpow2.f32 %v945_v45  ;;  %v969_v42 = vld [vmem:[#allocation4] sm:$0x1] }
 0x3be   : > { %1527 = vpow2.f32 %v947_v46 }
 0x3bf   : > { %1529 = vpow2.f32 %v949_v47 }
 0x3c0   : > { %1531 = vpow2.f32 %v951_v48  ;;  %v994_v48 = vld [vmem:[#allocation5] sm:$0xf] }
 0x3c1   : > { %1533 = vpow2.f32 %v953_v49 }
 0x3c2   : > { %1535 = vpow2.f32 %v955_v50 }
 0x3c3   : > { %v1518_v56 = vpop.eup %1517  ;;  %1537 = vpow2.f32 %v957_v51 }
 0x3c4   : > { %v1520_v58 = vpop.eup %1519  ;;  %1539 = vpow2.f32 %v959_v52 }
 0x3c5   : > { %v1522_v60 = vpop.eup %1521  ;;  %1541 = vpow2.f32 %v961_v53  ;;  %v971_v61 = vadd.f32 %v1520_v58, %v1518_v56  ;;  %v1388_v62 = vpack.c.bf16 %v1520_v58, %v1518_v56 }
 0x3c6   : > { %v1524_v0 = vpop.eup %1523  ;;  %1543 = vpow2.f32 %v963_v55 }
 0x3c7   : > { %v1526_v1 = vpop.eup %1525  ;;  %1545 = vpow2.f32 %v965_v57  ;;  %v972_v2 = vadd.f32 %v1522_v60, %v971_v61  ;;  %1389 = vmatpush3.bf16.msra.mxu1 %v1388_v62  ;;  %v1391_v3 = vpack.c.bf16 %v1524_v0, %v1522_v60 }
 0x3c8   : > { %v1528_v4 = vpop.eup %1527  ;;  %1547 = vpow2.f32 %v967_v59  ;;  %1390 = vmatprep.subr.bf16.mxu1 %v1707_v43 }
 0x3c9   : > { %v1530_v5 = vpop.eup %1529  ;;  %v973_v6 = vadd.f32 %v1524_v0, %v972_v2  ;;  %v1394_v7 = vpack.c.bf16 %v1528_v4, %v1526_v1  ;;  %1549 = vpow2.f32 %v913_v63 }
 0x3ca   : > { %v1532_v8 = vpop.eup %1531 }
 0x3cb   : > { %v1534_v9 = vpop.eup %1533  ;;  %v974_v10 = vadd.f32 %v1526_v1, %v973_v6  ;;  %1392 = vmatpush3.bf16.msra.mxu1 %v1391_v3  ;;  %v1397_v11 = vpack.c.bf16 %v1532_v8, %v1530_v5 }
 0x3cc   : > { %v1536_v12 = vpop.eup %1535  ;;  %1393 = vmatprep.subr.bf16.mxu1 %v1707_v43 }
 0x3cd   : > { %v1538_v13 = vpop.eup %1537  ;;  %v975_v14 = vadd.f32 %v1528_v4, %v974_v10  ;;  %v1400_v15 = vpack.c.bf16 %v1536_v12, %v1534_v9 }
 0x3ce   : > { %v1540_v16 = vpop.eup %1539 }
 0x3cf   : > { %v1542_v17 = vpop.eup %1541  ;;  %v976_v18 = vadd.f32 %v1530_v5, %v975_v14  ;;  %1395 = vmatpush3.bf16.msra.mxu1 %v1394_v7  ;;  %v1403_v19 = vpack.c.bf16 %v1540_v16, %v1538_v13 }
 0x3d0   : > { %v1544_v20 = vpop.eup %1543  ;;  %1396 = vmatprep.subr.bf16.mxu1 %v1707_v43 }
 0x3d1   : > { %v1546_v22 = vpop.eup %1545  ;;  %v977_v23 = vadd.f32 %v1532_v8, %v976_v18  ;;  %v1406_v24 = vpack.c.bf16 %v1544_v20, %v1542_v17 }
 0x3d2   : > { %v1548_v25 = vpop.eup %1547 }
 0x3d3   : > { %v1550_v26 = vpop.eup %1549  ;;  %v978_v27 = vadd.f32 %v1534_v9, %v977_v23  ;;  %1398 = vmatpush3.bf16.msra.mxu1 %v1397_v11  ;;  %v1409_v28 = vpack.c.bf16 %v1548_v25, %v1546_v22 }
 0x3d4   : > { %1399 = vmatprep.subr.bf16.mxu1 %v1707_v43  ;;  %v999_v29 = vrot.slane %v1550_v26, %v2002_v21  ;;  %v970_v46 = vmul.f32 %v1550_v26, %v969_v42 }
 0x3d5   : > { %v979_v30 = vadd.f32 %v1536_v12, %v978_v27 }
 0x3d6   : > { %v1001_v49 = vmul.f32 %v999_v29, %v994_v48 }
 0x3d7   : > { %v980_v31 = vadd.f32 %v1538_v13, %v979_v30  ;;  %1401 = vmatpush3.bf16.msra.mxu1 %v1400_v15 }
 0x3d8   : > { %1402 = vmatprep.subr.bf16.mxu1 %v1707_v43 }
 0x3d9   : > { %v981_v32 = vadd.f32 %v1540_v16, %v980_v31 }
 0x3db   : > { %v982_v33 = vadd.f32 %v1542_v17, %v981_v32  ;;  %1404 = vmatpush3.bf16.msra.mxu1 %v1403_v19 }
 0x3dc   : > { %1405 = vmatprep.subr.bf16.mxu1 %v1707_v43 }
 0x3dd   : > { %v983_v34 = vadd.f32 %v1544_v20, %v982_v33 }
 0x3df   : > { %v984_v35 = vadd.f32 %v1546_v22, %v983_v34  ;;  %1407 = vmatpush3.bf16.msra.mxu1 %v1406_v24 }
 0x3e0   : > { %1408 = vmatprep.subr.bf16.mxu1 %v1707_v43 }
 0x3e1   : > { %v985_v36 = vadd.f32 %v1548_v25, %v984_v35 }
 0x3e3   : > { %v986_v37 = vrot.slane %v985_v36, 4  ;;  %1410 = vmatpush3.bf16.msra.mxu1 %v1409_v28 }
 0x3e5   : > { %v987_v39 = vadd.f32 %v986_v37, %v985_v36 }
 0x3e6   : > { %1385 = vmatmul.mubr.f32.vlgmr.msra.gmra.mrb[0].mxu1 %v657_v38 }
 0x3e7   : > { %v988_v40 = vrot.slane %v987_v39, 2 }
 0x3e9   : > { %v989_v41 = vadd.f32 %v988_v40, %v987_v39 }
 0x3eb   : > { %v990_v44 = vrot.slane %v989_v41, 1 }
 0x3ed   : > { %v991_v45 = vadd.f32 %v990_v44, %v989_v41 }
 0x3ef   : > { %v992_v47 = vadd.f32 %v991_v45, %v970_v46 }
 0x3f1   : > { %993 = vst [vmem:[#allocation4] sm:$0x1] %v992_v47 }
 0x3f8   : > { %v1079_v52 = vld [vmem:[#allocation4] sm:$0x1] (!%p1265_p9) }
 0x3f9   : > { %1551 = vrcp.f32 (!%p1265_p9), %v1079_v52 }
 0x403   : > { %v1552_v53 = vpop.eup (!%p1265_p9), %1551 }
 0x404   : > { %v1086_v55 = vrot.slane (!%p1265_p9), %v1552_v53, %v2002_v21 }
 0x4b6   : > { %1078 = sbr.rel (%p1265_p9) target bundleno = 1223 (0x4c7), region = 68 }
 0x4b9   : > { %v1068_v50 = vpop.f32.mrb[0].mxu1 }
 0x4ba   : > { %v1072_v43 = vadd.f32 %v1068_v50, %v1001_v49  ;;  %v1386_v51 = vpop.f32.mrb[1].mxu1 }
 0x4bc   : > { %1073 = vst [vmem:[#allocation5] sm:$0xf] %v1072_v43 }
 0x4c3   : > { %v1081_v54 = vld [vmem:[#allocation5] sm:$0xf] }
 0x4c4   : > { %v1088_v56 = vmul.f32 %v1086_v55, %v1081_v54 }
 0x4c6   : > { %1089 = vst [vmem:[%s1928_s21] sm:$0xf] %v1088_v56 }
 0x4c7 PF: > { %s2122_s7 = sld [smem:[#allocation18_spill]]  ;;  %s1267_s11 = sshll.u32 %s1681_s10, 1 }
 0x4c8   : > { %s1102_s17 = sadd.s32 %s1677_s9, %s1267_s11  ;;  %s1106_s20 = sshll.u32 %s1928_s21, 4  ;;  %s2029_s20 = int_to_ptr.vmem [resolvable:$true] %s1106_s20 }
 0x4c9   : > { %s1268_s30 = sshll.u32 %s1102_s17, 6  ;;  %s2123_s26 = sld [smem:[#allocation23_spill]] }
 0x4ca   : > { %s1091_s6 = scalar_lea.sflag [#allocation10], %s1911_s15  ;;  %s1583_s24 = scalar_lea.vmem %s2029_s20, 64 }
 0x4cb   : > { %p1584_p0 = scmp.ne.s32.totalorder %s2029_s20, %s1583_s24  ;;  %s1710_s25 = smov [#allocation11]  }
 0x4cc   : > { %s1587_s10 = sshll.u32 %s1710_s25, 4  ;;  %s1588_s10 = int_to_ptr.vmem [resolvable:$false] %s1587_s10 }
 0x4cd   : > { %p2124_p4 = scmp.ne.s32.totalorder %s2122_s7, 0  ;;  %s1589_s9 = scalar_lea.vmem %s1588_s10, 128 }
 0x4ce   : > { %p1590_p11 = scmp.lt.s32.totalorder %s2029_s20, %s1588_s10  ;;  %p1591_p13 = scmp.lt.s32.totalorder %s1589_s9, %s1583_s24 }
 0x4cf   : > { %s1104_s5 = scalar_lea.hbm %s2123_s26, %s1268_s30  ;;  %p1585_p7 = pnand %p1584_p0, %p2124_p4 }
 0x4d0   : > { %p1592_p2 = por %p1591_p13, %p1590_p11 }
 0x4d1   : > { %p1586_p6 = pneg %p1585_p7 }
 0x4d3   : > { %p1593_p3 = pnand %p1592_p2, %p1586_p6 }
 0x4d5   : > { %1596 = shalt.err (!%p1593_p3)
}
 0x4d6   : > { %s1597_s21 = scalar_lea.hbm %s1104_s5, 64  ;;  %s1601_s8 = scalar_lea.hbm %s2123_s26, 256 }
 0x4d7   : > { %p1598_p5 = scmp.ne.s32.totalorder %s1104_s5, %s1597_s21  ;;  %p1602_p8 = scmp.lt.u32.totalorder %s1104_s5, %s2123_s26 }
 0x4d8   : > { %p1603_p1 = scmp.lt.u32.totalorder %s1601_s8, %s1597_s21  ;;  %p1605_p0 = scmp.lt.u32.totalorder %s1597_s21, %s1104_s5 }
 0x4d9   : > { %p1599_p10 = pnand %p1598_p5, %p2124_p4 }
 0x4da   : > { %p1604_p9 = por %p1603_p1, %p1602_p8 }
 0x4db   : > { %p1600_p12 = pneg %p1599_p10 }
 0x4dc   : > { %p1606_p7 = por %p1605_p0, %p1604_p9 }
 0x4de   : > { %p1607_p6 = pnand %p1606_p7, %p1600_p12 }
 0x4e0   : > { %1610 = shalt.err (!%p1607_p6)
}
 0x4e1   : > { %1413 = dma.vmem_to_hbm [thread:$0]  (%p2124_p4), %s2029_s20, 64, %s1104_s5, %s1091_s6  }
 0x4e2 PF: > { %s2125_s17 = sld [smem:[#allocation14_spill]]  ;;  %s2126_s30 = sld [smem:[#allocation19_spill]] }
 0x4e3   : > { %p1424_p11 = scmp.ge.s32.totalorder %s1697_s14, 2 }
 0x4e8   : > { %s1118_s23 = sand.u32 1, %s2125_s17   ;;  %p2127_p13 = scmp.ne.s32.totalorder %s2126_s30, 0 }
 0x4e9   : > { %s1119_s22 = scalar_lea.sflag [#allocation10], %s1118_s23 }
 0x4ea   : > { %p1420_p2 = pnand %p1424_p11, %p2127_p13 }
 0x4ec   : > { %1656 = dma.done.wait (!%p1420_p2), %s1119_s22, 64  }
 0x4ed   : > { %1658 = vsyncadd (!%p1420_p2), %s1119_s22, 4294967232  ;;  %s24_s14 = sadd.s32 1, %s1697_s14   ;;  %s2128_s30 = sld [smem:[#allocation15_spill]] }
 0x4ee   : > { %p21_p3 = scmp.ge.s32.totalorder %s24_s14, 10   ;;  %s2129_s11 = sld [smem:[#allocation16_spill]] }
 0x4ef   : > { %s2130_s7 = sld [smem:[#allocation17_spill]]  ;;  %s2131_s27 = smov %s1665_s28 }
 0x4f0   : > { %s2132_s28 = smov %s1669_s29  ;;  %s2133_s29 = smov %s1861_s16 }
 0x4f1   : > { %s2134_s9 = smov %s1689_s12  ;;  %s2135_s10 = smov %s1693_s13 }
 0x4f2   : > { %s2137_s13 = smov %s2147_s19  ;;  %23 = sbr.rel (!%p21_p3) target bundleno = 13 (0xd), region = 116 }
 0x4f5   : > { %s2136_s12 = smov %s2130_s7 }
 0x4f9   :  { %1124 = vsyncpa [#allocation9], 1 }
 0x4fa   :  { %1126 = vsyncpa [#allocation9 + $0x1], 1 }
 0x4fb   :  { %1127 = vsyncpa [#allocation10], 1 }
 0x4fc   :  { %1129 = vsyncpa [#allocation10 + $0x1], 1 }

</bundles_post_ra>
